<compile_context>
chip_gen: v7x
topology: tpu7x:2x2x1
jax: 0.10.0
libtpu: 0.0.40
codegen_flags: <defaults>
</compile_context>

<pallas_src>
import functools

import jax
import jax.numpy as jnp
import numpy as np
from jax import lax
from jax.experimental import pallas as pl
from jax.experimental.pallas import tpu as pltpu

# ---------------- model dimensions (small, consistent with the module) ----------------
F_DIM = 16          # config.input_feature_dim
N_DIR = 3           # n_dir_dims
SH_DIM = 16         # SphericalHarmonics degree 4 -> 16 outputs
IN_DIM = F_DIM + SH_DIM
HID = 64            # mlp_network_config.n_neurons
OUT_DIM = 3         # n_output_dims
TM = 512            # rays per grid step (sweep 512/1024/2048; VMEM use is trivial)


def _sh16_terms(x, y, z):
    """Degree-4 spherical harmonics (16 terms), tcnn coefficient convention.

    Works for any broadcast-compatible x/y/z shapes; returns a list of arrays
    with the same shape as x.
    """
    xy, yz, xz = x * y, y * z, x * z
    x2, y2, z2 = x * x, y * y, z * z
    return [
        jnp.full_like(x, 0.28209479177387814),
        -0.48860251190291987 * y,
        0.48860251190291987 * z,
        -0.48860251190291987 * x,
        1.0925484305920792 * xy,
        -1.0925484305920792 * yz,
        0.94617469575755997 * z2 - 0.31539156525251999,
        -1.0925484305920792 * xz,
        0.54627421529603959 * x2 - 0.54627421529603959 * y2,
        0.59004358992664352 * y * (-3.0 * x2 + y2),
        2.8906114426405538 * xy * z,
        0.45704579946446572 * y * (1.0 - 5.0 * z2),
        0.3731763325901154 * z * (5.0 * z2 - 3.0),
        0.45704579946446572 * x * (1.0 - 5.0 * z2),
        1.4453057213202769 * z * (x2 - y2),
        0.59004358992664352 * x * (x2 - 3.0 * y2),
    ]


# ---------------------------------- Pallas kernel --------------------------------------
def _radiance_kernel(feat_ref, dirsT_ref, w1ft_ref, w1st_ref, w2t_ref, w3t_ref,
                     out_ref, sh_scr):
    feat = feat_ref[...].astype(jnp.float32)          # (TM, F_DIM)
    d = dirsT_ref[...].astype(jnp.float32)            # (3, TM), lane-dense

    # The module maps dirs -> (dirs+1)/2 and the tcnn SH encoding maps [0,1] back
    # to [-1,1]; the round-trip is the identity (up to fp rounding), so use dirs
    # directly on lane-dense (1, TM) rows.
    x = d[0:1, :]
    y = d[1:2, :]
    z = d[2:3, :]

    # Build the (SH_DIM, TM) lane-dense SH basis tile in VMEM scratch so its
    # contribution to layer 1 can run on the MXU instead of 16 rank-1 VPU FMAs.
    terms = _sh16_terms(x, y, z)
    for i in range(SH_DIM):
        sh_scr[i:i + 1, :] = terms[i]
    sh = sh_scr[...]                                   # (SH_DIM, TM)

    # Layer 1 (transposed): h^T = W1_feat^T @ feat^T + W1_sh^T @ sh
    #   feature half: contract over F with feat kept row-major (A @ B^T on MXU).
    h = lax.dot_general(w1ft_ref[...], feat,
                        dimension_numbers=(((1,), (1,)), ((), ())),
                        preferred_element_type=jnp.float32)          # (HID, TM)
    h = h + jnp.dot(w1st_ref[...], sh, preferred_element_type=jnp.float32)
    h = jnp.maximum(h, 0.0)

    # Layer 2
    h = jnp.maximum(
        jnp.dot(w2t_ref[...], h, preferred_element_type=jnp.float32), 0.0)   # (HID, TM)

    # Output layer + color_activation (sigmoid); lane-dense (3, TM) store.
    logits = jnp.dot(w3t_ref[...], h, preferred_element_type=jnp.float32)    # (3, TM)
    out_ref[...] = jax.nn.sigmoid(logits).astype(out_ref.dtype)


@functools.partial(jax.jit, static_argnames=("tile_m",))
def volume_radiance_forward(features, dirs, w1, w2, w3, *, tile_m=TM):
    """features: (..., F_DIM), dirs: (..., 3) -> color: (..., 3) float32."""
    lead_shape = features.shape[:-1]
    feat2d = features.reshape(-1, F_DIM)
    n = feat2d.shape[0]

    n_blocks = pl.cdiv(n, tile_m)
    n_pad = n_blocks * tile_m

    # dirs / output are tiny; give them lane-dense (C, N) layouts. Padding the
    # dirs slab is cheap; the large features array is streamed un-padded and the
    # ragged final row-block is handled by Pallas (garbage rows are sliced off).
    dirsT = dirs.reshape(-1, N_DIR).astype(jnp.float32).T            # (3, n)
    if n_pad != n:
        dirsT = jnp.pad(dirsT, ((0, 0), (0, n_pad - n)))

    # Tiny weight transposes / split done on the host side of the kernel.
    w1ft = w1[:F_DIM, :].T                                           # (HID, F_DIM)
    w1st = w1[F_DIM:, :].T                                           # (HID, SH_DIM)
    w2t = w2.T                                                       # (HID, HID)
    w3t = w3.T                                                       # (OUT_DIM, HID)

    outT = pl.pallas_call(
        _radiance_kernel,
        out_shape=jax.ShapeDtypeStruct((OUT_DIM, n_pad), jnp.float32),
        grid=(n_blocks,),
        in_specs=[
            # Features: only sizable streamed input. (On v7x, if the DMA shows up
            # exposed, add pipeline_mode=pl.Buffered(3) here.)
            pl.BlockSpec((tile_m, F_DIM), lambda i: (i, 0)),
            pl.BlockSpec((N_DIR, tile_m), lambda i: (0, i)),
            pl.BlockSpec((HID, F_DIM), lambda i: (0, 0)),
            pl.BlockSpec((HID, SH_DIM), lambda i: (0, 0)),
            pl.BlockSpec((HID, HID), lambda i: (0, 0)),
            pl.BlockSpec((OUT_DIM, HID), lambda i: (0, 0)),
        ],
        out_specs=pl.BlockSpec((OUT_DIM, tile_m), lambda i: (0, i)),
        scratch_shapes=[pltpu.VMEM((SH_DIM, tile_m), jnp.float32)],
        compiler_params=pltpu.CompilerParams(
            dimension_semantics=("parallel",)),
    )(feat2d, dirsT, w1ft, w1st, w2t, w3t)

    color = outT[:, :n].T                                            # (n, 3)
    return color.reshape(*lead_shape, OUT_DIM).astype(jnp.float32)


# --------------------------------- pure-JAX reference ----------------------------------
def _sh16_ref(d):
    x, y, z = d[..., 0:1], d[..., 1:2], d[..., 2:3]
    return jnp.concatenate(_sh16_terms(x, y, z), axis=-1)


def reference_forward(features, dirs, w1, w2, w3):
    lead_shape = features.shape[:-1]
    feat2d = features.reshape(-1, F_DIM)
    # Faithful to the module: (dirs+1)/2 then tcnn SH maps [0,1] -> [-1,1].
    d01 = (dirs.reshape(-1, N_DIR) + 1.0) / 2.0
    d = d01 * 2.0 - 1.0
    inp = jnp.concatenate([feat2d, _sh16_ref(d)], axis=-1)
    h = jnp.maximum(inp @ w1, 0.0)
    h = jnp.maximum(h @ w2, 0.0)
    color = jax.nn.sigmoid(h @ w3)
    return color.reshape(*lead_shape, OUT_DIM).astype(jnp.float32)


# ------------------------------------------ main ---------------------------------------
if __name__ == "__main__":
    key = jax.random.PRNGKey(0)
    k_feat, k_dir, k1, k2, k3 = jax.random.split(key, 5)

    # Small ray batch: (B=2, H=16, W=16) rays, each with a 16-dim geometry feature
    # and a 3-dim viewing direction.
    features = jax.random.normal(k_feat, (2, 16, 16, F_DIM), dtype=jnp.float32)
    dirs = jax.random.normal(k_dir, (2, 16, 16, N_DIR), dtype=jnp.float32)
    dirs = dirs / jnp.linalg.norm(dirs, axis=-1, keepdims=True)

    # Deterministic parameter init (VanillaMLP: Linear layers, bias=False).
    w1 = jax.random.normal(k1, (IN_DIM, HID), dtype=jnp.float32) * np.sqrt(2.0 / IN_DIM)
    w2 = jax.random.normal(k2, (HID, HID), dtype=jnp.float32) * np.sqrt(2.0 / HID)
    w3 = jax.random.normal(k3, (HID, OUT_DIM), dtype=jnp.float32) * np.sqrt(2.0 / HID)

    color = volume_radiance_forward(features, dirs, w1, w2, w3)
    color = jax.block_until_ready(color)

    ref = reference_forward(features, dirs, w1, w2, w3)
    np.testing.assert_allclose(np.asarray(color), np.asarray(ref), atol=1e-5, rtol=1e-5)
    assert color.shape == (2, 16, 16, OUT_DIM) and color.dtype == jnp.float32

    print("KERNEL_OK")
</pallas_src>

<mosaic_0001>
module attributes {stable_mosaic.version = 11 : i64} {
  func.func @_radiance_kernel(%arg0: i32, %arg1: memref<512x16xf32, #tpu.memory_space<vmem>>, %arg2: memref<3x512xf32, #tpu.memory_space<vmem>>, %arg3: memref<64x16xf32, #tpu.memory_space<vmem>>, %arg4: memref<64x16xf32, #tpu.memory_space<vmem>>, %arg5: memref<64x64xf32, #tpu.memory_space<vmem>>, %arg6: memref<3x64xf32, #tpu.memory_space<vmem>>, %arg7: memref<3x512xf32, #tpu.memory_space<vmem>>, %arg8: memref<16x512xf32, #tpu.memory_space<vmem>>) attributes {dimension_semantics = [#tpu.dimension_semantics<parallel>], iteration_bounds = array<i64: 1>, scalar_prefetch = 0 : i64, scratch_operands = 1 : i64, tpu.core_type = #tpu.core_type<tc>, window_params = [{transform_indices = @transform_0, window_bounds = array<i64: 512, 16>}, {transform_indices = @transform_1, window_bounds = array<i64: 3, 512>}, {pipeline_mode = #tpu.pipeline_mode<synchronous>, transform_indices = @transform_2, window_bounds = array<i64: 64, 16>}, {pipeline_mode = #tpu.pipeline_mode<synchronous>, transform_indices = @transform_3, window_bounds = array<i64: 64, 16>}, {pipeline_mode = #tpu.pipeline_mode<synchronous>, transform_indices = @transform_4, window_bounds = array<i64: 64, 64>}, {pipeline_mode = #tpu.pipeline_mode<synchronous>, transform_indices = @transform_5, window_bounds = array<i64: 3, 64>}, {transform_indices = @transform_6, window_bounds = array<i64: 3, 512>}]} {
    %c0 = arith.constant 0 : index
    %c0_0 = arith.constant 0 : index
    %0 = vector.load %arg1[%c0, %c0_0] : memref<512x16xf32, #tpu.memory_space<vmem>>, vector<512x16xf32>
    %c0_1 = arith.constant 0 : index
    %c0_2 = arith.constant 0 : index
    %1 = vector.load %arg2[%c0_1, %c0_2] : memref<3x512xf32, #tpu.memory_space<vmem>>, vector<3x512xf32>
    %2 = vector.extract_strided_slice %1 {offsets = [0, 0], sizes = [1, 512], strides = [1, 1]} : vector<3x512xf32> to vector<1x512xf32>
    %3 = vector.extract_strided_slice %1 {offsets = [1, 0], sizes = [1, 512], strides = [1, 1]} : vector<3x512xf32> to vector<1x512xf32>
    %4 = vector.extract_strided_slice %1 {offsets = [2, 0], sizes = [1, 512], strides = [1, 1]} : vector<3x512xf32> to vector<1x512xf32>
    %5 = arith.mulf %2, %3 : vector<1x512xf32>
    %6 = arith.mulf %3, %4 : vector<1x512xf32>
    %7 = arith.mulf %2, %4 : vector<1x512xf32>
    %8 = arith.mulf %2, %2 : vector<1x512xf32>
    %9 = arith.mulf %3, %3 : vector<1x512xf32>
    %10 = arith.mulf %4, %4 : vector<1x512xf32>
    %cst = arith.constant 0.282094806 : f32
    %11 = vector.broadcast %cst : f32 to vector<1x512xf32>
    %cst_3 = arith.constant -0.488602519 : f32
    %12 = vector.broadcast %cst_3 : f32 to vector<1x512xf32>
    %13 = arith.mulf %12, %3 : vector<1x512xf32>
    %cst_4 = arith.constant 0.488602519 : f32
    %14 = vector.broadcast %cst_4 : f32 to vector<1x512xf32>
    %15 = arith.mulf %14, %4 : vector<1x512xf32>
    %cst_5 = arith.constant -0.488602519 : f32
    %16 = vector.broadcast %cst_5 : f32 to vector<1x512xf32>
    %17 = arith.mulf %16, %2 : vector<1x512xf32>
    %cst_6 = arith.constant 1.09254849 : f32
    %18 = vector.broadcast %cst_6 : f32 to vector<1x512xf32>
    %19 = arith.mulf %18, %5 : vector<1x512xf32>
    %cst_7 = arith.constant -1.09254849 : f32
    %20 = vector.broadcast %cst_7 : f32 to vector<1x512xf32>
    %21 = arith.mulf %20, %6 : vector<1x512xf32>
    %cst_8 = arith.constant 0.946174681 : f32
    %22 = vector.broadcast %cst_8 : f32 to vector<1x512xf32>
    %23 = arith.mulf %22, %10 : vector<1x512xf32>
    %cst_9 = arith.constant 0.31539157 : f32
    %24 = vector.broadcast %cst_9 : f32 to vector<1x512xf32>
    %25 = arith.subf %23, %24 : vector<1x512xf32>
    %cst_10 = arith.constant -1.09254849 : f32
    %26 = vector.broadcast %cst_10 : f32 to vector<1x512xf32>
    %27 = arith.mulf %26, %7 : vector<1x512xf32>
    %cst_11 = arith.constant 0.546274245 : f32
    %28 = vector.broadcast %cst_11 : f32 to vector<1x512xf32>
    %29 = arith.mulf %28, %8 : vector<1x512xf32>
    %cst_12 = arith.constant 0.546274245 : f32
    %30 = vector.broadcast %cst_12 : f32 to vector<1x512xf32>
    %31 = arith.mulf %30, %9 : vector<1x512xf32>
    %32 = arith.subf %29, %31 : vector<1x512xf32>
    %cst_13 = arith.constant 0.590043604 : f32
    %33 = vector.broadcast %cst_13 : f32 to vector<1x512xf32>
    %34 = arith.mulf %33, %3 : vector<1x512xf32>
    %cst_14 = arith.constant -3.000000e+00 : f32
    %35 = vector.broadcast %cst_14 : f32 to vector<1x512xf32>
    %36 = arith.mulf %35, %8 : vector<1x512xf32>
    %37 = arith.addf %36, %9 : vector<1x512xf32>
    %38 = arith.mulf %34, %37 : vector<1x512xf32>
    %cst_15 = arith.constant 2.89061141 : f32
    %39 = vector.broadcast %cst_15 : f32 to vector<1x512xf32>
    %40 = arith.mulf %39, %5 : vector<1x512xf32>
    %41 = arith.mulf %40, %4 : vector<1x512xf32>
    %cst_16 = arith.constant 0.457045794 : f32
    %42 = vector.broadcast %cst_16 : f32 to vector<1x512xf32>
    %43 = arith.mulf %42, %3 : vector<1x512xf32>
    %cst_17 = arith.constant 5.000000e+00 : f32
    %44 = vector.broadcast %cst_17 : f32 to vector<1x512xf32>
    %45 = arith.mulf %44, %10 : vector<1x512xf32>
    %cst_18 = arith.constant 1.000000e+00 : f32
    %46 = vector.broadcast %cst_18 : f32 to vector<1x512xf32>
    %47 = arith.subf %46, %45 : vector<1x512xf32>
    %48 = arith.mulf %43, %47 : vector<1x512xf32>
    %cst_19 = arith.constant 0.373176336 : f32
    %49 = vector.broadcast %cst_19 : f32 to vector<1x512xf32>
    %50 = arith.mulf %49, %4 : vector<1x512xf32>
    %cst_20 = arith.constant 5.000000e+00 : f32
    %51 = vector.broadcast %cst_20 : f32 to vector<1x512xf32>
    %52 = arith.mulf %51, %10 : vector<1x512xf32>
    %cst_21 = arith.constant 3.000000e+00 : f32
    %53 = vector.broadcast %cst_21 : f32 to vector<1x512xf32>
    %54 = arith.subf %52, %53 : vector<1x512xf32>
    %55 = arith.mulf %50, %54 : vector<1x512xf32>
    %cst_22 = arith.constant 0.457045794 : f32
    %56 = vector.broadcast %cst_22 : f32 to vector<1x512xf32>
    %57 = arith.mulf %56, %2 : vector<1x512xf32>
    %cst_23 = arith.constant 5.000000e+00 : f32
    %58 = vector.broadcast %cst_23 : f32 to vector<1x512xf32>
    %59 = arith.mulf %58, %10 : vector<1x512xf32>
    %cst_24 = arith.constant 1.000000e+00 : f32
    %60 = vector.broadcast %cst_24 : f32 to vector<1x512xf32>
    %61 = arith.subf %60, %59 : vector<1x512xf32>
    %62 = arith.mulf %57, %61 : vector<1x512xf32>
    %cst_25 = arith.constant 1.44530571 : f32
    %63 = vector.broadcast %cst_25 : f32 to vector<1x512xf32>
    %64 = arith.mulf %63, %4 : vector<1x512xf32>
    %65 = arith.subf %8, %9 : vector<1x512xf32>
    %66 = arith.mulf %64, %65 : vector<1x512xf32>
    %cst_26 = arith.constant 0.590043604 : f32
    %67 = vector.broadcast %cst_26 : f32 to vector<1x512xf32>
    %68 = arith.mulf %67, %2 : vector<1x512xf32>
    %cst_27 = arith.constant 3.000000e+00 : f32
    %69 = vector.broadcast %cst_27 : f32 to vector<1x512xf32>
    %70 = arith.mulf %69, %9 : vector<1x512xf32>
    %71 = arith.subf %8, %70 : vector<1x512xf32>
    %72 = arith.mulf %68, %71 : vector<1x512xf32>
    %c0_28 = arith.constant 0 : index
    %c0_29 = arith.constant 0 : index
    %73 = vector.load %arg8[%c0_28, %c0_29] : memref<16x512xf32, #tpu.memory_space<vmem>>, vector<1x512xf32>
    tpu.vector_store %arg8[%c0_28, %c0_29], %11 {strides = array<i32>} : memref<16x512xf32, #tpu.memory_space<vmem>>, vector<1x512xf32>,
    %c1 = arith.constant 1 : index
    %c0_30 = arith.constant 0 : index
    %74 = vector.load %arg8[%c1, %c0_30] : memref<16x512xf32, #tpu.memory_space<vmem>>, vector<1x512xf32>
    tpu.vector_store %arg8[%c1, %c0_30], %13 {strides = array<i32>} : memref<16x512xf32, #tpu.memory_space<vmem>>, vector<1x512xf32>,
    %c2 = arith.constant 2 : index
    %c0_31 = arith.constant 0 : index
    %75 = vector.load %arg8[%c2, %c0_31] : memref<16x512xf32, #tpu.memory_space<vmem>>, vector<1x512xf32>
    tpu.vector_store %arg8[%c2, %c0_31], %15 {strides = array<i32>} : memref<16x512xf32, #tpu.memory_space<vmem>>, vector<1x512xf32>,
    %c3 = arith.constant 3 : index
    %c0_32 = arith.constant 0 : index
    %76 = vector.load %arg8[%c3, %c0_32] : memref<16x512xf32, #tpu.memory_space<vmem>>, vector<1x512xf32>
    tpu.vector_store %arg8[%c3, %c0_32], %17 {strides = array<i32>} : memref<16x512xf32, #tpu.memory_space<vmem>>, vector<1x512xf32>,
    %c4 = arith.constant 4 : index
    %c0_33 = arith.constant 0 : index
    %77 = vector.load %arg8[%c4, %c0_33] : memref<16x512xf32, #tpu.memory_space<vmem>>, vector<1x512xf32>
    tpu.vector_store %arg8[%c4, %c0_33], %19 {strides = array<i32>} : memref<16x512xf32, #tpu.memory_space<vmem>>, vector<1x512xf32>,
    %c5 = arith.constant 5 : index
    %c0_34 = arith.constant 0 : index
    %78 = vector.load %arg8[%c5, %c0_34] : memref<16x512xf32, #tpu.memory_space<vmem>>, vector<1x512xf32>
    tpu.vector_store %arg8[%c5, %c0_34], %21 {strides = array<i32>} : memref<16x512xf32, #tpu.memory_space<vmem>>, vector<1x512xf32>,
    %c6 = arith.constant 6 : index
    %c0_35 = arith.constant 0 : index
    %79 = vector.load %arg8[%c6, %c0_35] : memref<16x512xf32, #tpu.memory_space<vmem>>, vector<1x512xf32>
    tpu.vector_store %arg8[%c6, %c0_35], %25 {strides = array<i32>} : memref<16x512xf32, #tpu.memory_space<vmem>>, vector<1x512xf32>,
    %c7 = arith.constant 7 : index
    %c0_36 = arith.constant 0 : index
    %80 = vector.load %arg8[%c7, %c0_36] : memref<16x512xf32, #tpu.memory_space<vmem>>, vector<1x512xf32>
    tpu.vector_store %arg8[%c7, %c0_36], %27 {strides = array<i32>} : memref<16x512xf32, #tpu.memory_space<vmem>>, vector<1x512xf32>,
    %c8 = arith.constant 8 : index
    %c0_37 = arith.constant 0 : index
    %81 = vector.load %arg8[%c8, %c0_37] : memref<16x512xf32, #tpu.memory_space<vmem>>, vector<1x512xf32>
    tpu.vector_store %arg8[%c8, %c0_37], %32 {strides = array<i32>} : memref<16x512xf32, #tpu.memory_space<vmem>>, vector<1x512xf32>,
    %c9 = arith.constant 9 : index
    %c0_38 = arith.constant 0 : index
    %82 = vector.load %arg8[%c9, %c0_38] : memref<16x512xf32, #tpu.memory_space<vmem>>, vector<1x512xf32>
    tpu.vector_store %arg8[%c9, %c0_38], %38 {strides = array<i32>} : memref<16x512xf32, #tpu.memory_space<vmem>>, vector<1x512xf32>,
    %c10 = arith.constant 10 : index
    %c0_39 = arith.constant 0 : index
    %83 = vector.load %arg8[%c10, %c0_39] : memref<16x512xf32, #tpu.memory_space<vmem>>, vector<1x512xf32>
    tpu.vector_store %arg8[%c10, %c0_39], %41 {strides = array<i32>} : memref<16x512xf32, #tpu.memory_space<vmem>>, vector<1x512xf32>,
    %c11 = arith.constant 11 : index
    %c0_40 = arith.constant 0 : index
    %84 = vector.load %arg8[%c11, %c0_40] : memref<16x512xf32, #tpu.memory_space<vmem>>, vector<1x512xf32>
    tpu.vector_store %arg8[%c11, %c0_40], %48 {strides = array<i32>} : memref<16x512xf32, #tpu.memory_space<vmem>>, vector<1x512xf32>,
    %c12 = arith.constant 12 : index
    %c0_41 = arith.constant 0 : index
    %85 = vector.load %arg8[%c12, %c0_41] : memref<16x512xf32, #tpu.memory_space<vmem>>, vector<1x512xf32>
    tpu.vector_store %arg8[%c12, %c0_41], %55 {strides = array<i32>} : memref<16x512xf32, #tpu.memory_space<vmem>>, vector<1x512xf32>,
    %c13 = arith.constant 13 : index
    %c0_42 = arith.constant 0 : index
    %86 = vector.load %arg8[%c13, %c0_42] : memref<16x512xf32, #tpu.memory_space<vmem>>, vector<1x512xf32>
    tpu.vector_store %arg8[%c13, %c0_42], %62 {strides = array<i32>} : memref<16x512xf32, #tpu.memory_space<vmem>>, vector<1x512xf32>,
    %c14 = arith.constant 14 : index
    %c0_43 = arith.constant 0 : index
    %87 = vector.load %arg8[%c14, %c0_43] : memref<16x512xf32, #tpu.memory_space<vmem>>, vector<1x512xf32>
    tpu.vector_store %arg8[%c14, %c0_43], %66 {strides = array<i32>} : memref<16x512xf32, #tpu.memory_space<vmem>>, vector<1x512xf32>,
    %c15 = arith.constant 15 : index
    %c0_44 = arith.constant 0 : index
    %88 = vector.load %arg8[%c15, %c0_44] : memref<16x512xf32, #tpu.memory_space<vmem>>, vector<1x512xf32>
    tpu.vector_store %arg8[%c15, %c0_44], %72 {strides = array<i32>} : memref<16x512xf32, #tpu.memory_space<vmem>>, vector<1x512xf32>,
    %c0_45 = arith.constant 0 : index
    %c0_46 = arith.constant 0 : index
    %89 = vector.load %arg8[%c0_45, %c0_46] : memref<16x512xf32, #tpu.memory_space<vmem>>, vector<16x512xf32>
    %c0_47 = arith.constant 0 : index
    %c0_48 = arith.constant 0 : index
    %90 = vector.load %arg3[%c0_47, %c0_48] : memref<64x16xf32, #tpu.memory_space<vmem>>, vector<64x16xf32>
    %cst_49 = arith.constant dense<0.000000e+00> : vector<64x512xf32>
    %91 = tpu.matmul %90, %0, %cst_49 {dimension_numbers = #tpu.dot_dimension_numbers<[1], [1], [0], [0], [0, 0, 1, 0], [], []>} : vector<64x16xf32>, vector<512x16xf32>, vector<64x512xf32> -> vector<64x512xf32>
    %c0_50 = arith.constant 0 : index
    %c0_51 = arith.constant 0 : index
    %92 = vector.load %arg4[%c0_50, %c0_51] : memref<64x16xf32, #tpu.memory_space<vmem>>, vector<64x16xf32>
    %cst_52 = arith.constant dense<0.000000e+00> : vector<64x512xf32>
    %93 = tpu.matmul %92, %89, %cst_52 {dimension_numbers = #tpu.dot_dimension_numbers<[1], [0], [0], [1], [0, 0, 1, 1], [], []>} : vector<64x16xf32>, vector<16x512xf32>, vector<64x512xf32> -> vector<64x512xf32>
    %94 = arith.addf %91, %93 : vector<64x512xf32>
    %cst_53 = arith.constant 0.000000e+00 : f32
    %95 = vector.broadcast %cst_53 : f32 to vector<64x512xf32>
    %96 = arith.maximumf %94, %95 : vector<64x512xf32>
    %c0_54 = arith.constant 0 : index
    %c0_55 = arith.constant 0 : index
    %97 = vector.load %arg5[%c0_54, %c0_55] : memref<64x64xf32, #tpu.memory_space<vmem>>, vector<64x64xf32>
    %cst_56 = arith.constant dense<0.000000e+00> : vector<64x512xf32>
    %98 = tpu.matmul %97, %96, %cst_56 {dimension_numbers = #tpu.dot_dimension_numbers<[1], [0], [0], [1], [0, 0, 1, 1], [], []>} : vector<64x64xf32>, vector<64x512xf32>, vector<64x512xf32> -> vector<64x512xf32>
    %cst_57 = arith.constant 0.000000e+00 : f32
    %99 = vector.broadcast %cst_57 : f32 to vector<64x512xf32>
    %100 = arith.maximumf %98, %99 : vector<64x512xf32>
    %c0_58 = arith.constant 0 : index
    %c0_59 = arith.constant 0 : index
    %101 = vector.load %arg6[%c0_58, %c0_59] : memref<3x64xf32, #tpu.memory_space<vmem>>, vector<3x64xf32>
    %cst_60 = arith.constant dense<0.000000e+00> : vector<3x512xf32>
    %102 = tpu.matmul %101, %100, %cst_60 {dimension_numbers = #tpu.dot_dimension_numbers<[1], [0], [0], [1], [0, 0, 1, 1], [], []>} : vector<3x64xf32>, vector<64x512xf32>, vector<3x512xf32> -> vector<3x512xf32>
    %103 = arith.negf %102 : vector<3x512xf32>
    %104 = math.exp %103 : vector<3x512xf32>
    %cst_61 = arith.constant 1.000000e+00 : f32
    %105 = vector.broadcast %cst_61 : f32 to vector<3x512xf32>
    %106 = arith.addf %105, %104 : vector<3x512xf32>
    %107 = arith.divf %105, %106 : vector<3x512xf32>
    %c0_62 = arith.constant 0 : index
    %c0_63 = arith.constant 0 : index
    %108 = vector.load %arg7[%c0_62, %c0_63] : memref<3x512xf32, #tpu.memory_space<vmem>>, vector<3x512xf32>
    tpu.vector_store %arg7[%c0_62, %c0_63], %107 {strides = array<i32>} : memref<3x512xf32, #tpu.memory_space<vmem>>, vector<3x512xf32>,
    return
  }
  func.func @transform_0(%arg0: i32) -> (i32, i32) {
    %c0_i32 = arith.constant 0 : i32
    %c0_i32_0 = arith.constant 0 : i32
    return %arg0, %c0_i32 : i32, i32
  }
  func.func @transform_1(%arg0: i32) -> (i32, i32) {
    %c0_i32 = arith.constant 0 : i32
    %c0_i32_0 = arith.constant 0 : i32
    return %c0_i32, %arg0 : i32, i32
  }
  func.func @transform_2(%arg0: i32) -> (i32, i32) {
    %c0_i32 = arith.constant 0 : i32
    %c0_i32_0 = arith.constant 0 : i32
    %c0_i32_1 = arith.constant 0 : i32
    return %c0_i32, %c0_i32_0 : i32, i32
  }
  func.func @transform_3(%arg0: i32) -> (i32, i32) {
    %c0_i32 = arith.constant 0 : i32
    %c0_i32_0 = arith.constant 0 : i32
    %c0_i32_1 = arith.constant 0 : i32
    return %c0_i32, %c0_i32_0 : i32, i32
  }
  func.func @transform_4(%arg0: i32) -> (i32, i32) {
    %c0_i32 = arith.constant 0 : i32
    %c0_i32_0 = arith.constant 0 : i32
    %c0_i32_1 = arith.constant 0 : i32
    return %c0_i32, %c0_i32_0 : i32, i32
  }
  func.func @transform_5(%arg0: i32) -> (i32, i32) {
    %c0_i32 = arith.constant 0 : i32
    %c0_i32_0 = arith.constant 0 : i32
    %c0_i32_1 = arith.constant 0 : i32
    return %c0_i32, %c0_i32_0 : i32, i32
  }
  func.func @transform_6(%arg0: i32) -> (i32, i32) {
    %c0_i32 = arith.constant 0 : i32
    %c0_i32_0 = arith.constant 0 : i32
    return %c0_i32, %arg0 : i32, i32
  }
}

</mosaic_0001>

<bundles_post_ra>
// kernel: volume_radiance_forward.1
= control target key start
LH: loop header
LB: loop body
LE: loop exit
PB: predicated region body
PF: predicated region fallthrough
CT: control target
= control target key end

     0   :  { %v2302_v2 = vmov 0.0   ;;  %v2303_v25 = vmov 1966171168   ;;  %v217_v33 = vlaneseq  ;;  %vm655_vm1 = vcmask 130048   ;;  %s3008_s1 = inlined_call_operand.vmem [shape: f32[3,512], index: 1, kind: input, shape index: {}]   ;;  %s3009_s0 = inlined_call_operand.vmem [shape: f32[512,16], index: 0, kind: input, shape index: {}]   ;;  %s3010_s3 = inlined_call_operand.vmem [shape: f32[64,16], index: 3, kind: input, shape index: {}]   ;;  %s3011_s2 = inlined_call_operand.vmem [shape: f32[64,16], index: 2, kind: input, shape index: {}]   ;;  %s3012_s4 = inlined_call_operand.vmem [shape: f32[64,64], index: 4, kind: input, shape index: {}]   ;;  %s3013_s5 = inlined_call_operand.vmem [shape: f32[3,64], index: 5, kind: input, shape index: {}]   ;;  %s3014_s6 = inlined_call_operand.vmem [shape: f32[3,512], index: 6, kind: output, shape index: {}]  }
   0x1   :  { %v2343_v0 = vld [vmem:[%s3008_s1] sm:$0x77]  ;;  %v2348_v1 = vld [vmem:[%s3008_s1 + $0x8] sm:$0x77]  ;;  %744 = vmatprep.mubr.f32.mxu0 %v2302_v2  ;;  %857 = vmatprep.mubr.f32.mxu1 %v2302_v2  ;;  %v2390_v26 = vunpack.c.l.s4 %v2303_v25  ;;  %vm2575_vm2 = vmpackc.low %vm655_vm1, %vm655_vm1  ;;  %vm1388_vm3 = vcmask 523264  }
   0x2   :  { %v1855_v3 = vrot.slane %v2343_v0, 9  ;;  %v1856_v4 = vrot.slane %v2348_v1, 9  ;;  %v99_v5 = vrot.slane %v2343_v0, 6  ;;  %v101_v6 = vrot.slane %v2348_v1, 6 }
   0x3   :  { %v2358_v7 = vmul.f32 %v2343_v0, %v2343_v0  ;;  %v2362_v10 = vmul.f32 %v2348_v1, %v2348_v1  ;;  %v2367_v13 = vmul.f32 -0.48860252, %v2343_v0  ;;  %v2373_v17 = vmul.f32 -0.48860252, %v2348_v1 }
   0x4   :  { %v100_v8 = vrot.slane %v99_v5, 4  ;;  %v102_v9 = vrot.slane %v101_v6, 4  ;;  %v97_v11 = vmul.f32 %v1855_v3, %v2343_v0  ;;  %v98_v12 = vmul.f32 %v1856_v4, %v2348_v1 }
   0x5   :  { %v117_v14 = vmul.f32 0.9461747, %v2358_v7  ;;  %v2376_v18 = vmul.f32 0.48860252, %v2343_v0  ;;  %v2379_v19 = vmul.f32 0.48860252, %v2348_v1  ;;  %v227_v41 = vunpack.c.0.s8 %v2390_v26 }
   0x6   :  { %v105_v15 = vmul.f32 %v100_v8, %v2343_v0  ;;  %v106_v16 = vmul.f32 %v102_v9, %v2348_v1  ;;  %v2381_v20 = vmul.f32 1.0925485, %v97_v11  ;;  %v2383_v21 = vmul.f32 1.0925485, %v98_v12 }
   0x7   :  { %v2385_v22 = vmul.f32 -1.0925485, %v97_v11  ;;  %v2387_v23 = vmul.f32 -1.0925485, %v98_v12  ;;  %v118_v24 = vmul.f32 0.9461747, %v2362_v10 }
   0x8   :  { %v2392_v27 = vadd.f32 -0.31539157, %v117_v14  ;;  %v123_v28 = vmul.f32 0.54627424, %v2358_v7  ;;  %v124_v29 = vmul.f32 0.54627424, %v2362_v10 }
   0x9   :  { %v2396_v30 = vmul.f32 -1.0925485, %v105_v15  ;;  %v2398_v31 = vmul.f32 -1.0925485, %v106_v16  ;;  %v137_v32 = vmul.f32 -3.0, %v2358_v7  ;;  %v138_v35 = vmul.f32 -3.0, %v2362_v10 }
   0xa   :  { %v1859_v34 = vrot.slane %v123_v28, 9  ;;  %v141_v36 = vrot.slane %v2358_v7, 5  ;;  %v143_v37 = vrot.slane %v2362_v10, 5  ;;  %v2404_v38 = vadd.f32 -0.31539157, %v118_v24 }
   0xb   :  { %v1860_v39 = vrot.slane %v124_v29, 9  ;;  %v157_v40 = vmul.f32 2.8906114, %v97_v11  ;;  %v135_v42 = vmul.f32 0.5900436, %v2343_v0  ;;  %v163_v49 = vmul.f32 5.0, %v2358_v7 }
   0xc   :  { %v136_v43 = vmul.f32 0.5900436, %v2348_v1  ;;  %v142_v44 = vrot.slane %v141_v36, 4  ;;  %v144_v45 = vrot.slane %v143_v37, 4  ;;  %v2409_v46 = vsub.f32 %v123_v28, %v1859_v34 }
   0xd   :  { %v158_v47 = vmul.f32 2.8906114, %v98_v12  ;;  %v161_v48 = vmul.f32 0.4570458, %v2343_v0  ;;  %v164_v52 = vmul.f32 5.0, %v2362_v10  ;;  %v2415_v54 = vsub.f32 %v124_v29, %v1860_v39 }
   0xe   :  { %v147_v50 = vadd.f32 %v142_v44, %v137_v32  ;;  %v148_v51 = vadd.f32 %v144_v45, %v138_v35  ;;  %v177_v53 = vmul.f32 0.37317634, %v2343_v0  ;;  %v2417_v55 = vmul.f32 %v157_v40, %v100_v8 }
   0xf   :  { %v165_v56 = vsub.f32 1.0, %v163_v49  ;;  %v1863_v57 = vadd.f32 -3.0, %v163_v49  ;;  %v162_v60 = vmul.f32 0.4570458, %v2348_v1  ;;  %v166_v61 = vsub.f32 1.0, %v164_v52 }
  0x10   :  { %v151_v58 = vrot.slane %v147_v50, 7  ;;  %v152_v59 = vrot.slane %v148_v51, 7  ;;  %v2420_v62 = vmul.f32 %v158_v47, %v102_v9  ;;  %v178_v63 = vmul.f32 0.37317634, %v2348_v1 }
  0x11   :  { %v1864_v3 = vadd.f32 -3.0, %v164_v52  ;;  %v191_v4 = vmul.f32 1.4453057, %v2343_v0  ;;  %v1861_v5 = vrot.slane %v165_v56, 9  ;;  %v2424_v6 = vmul.f32 %v1863_v57, %v177_v53 }
  0x12   :  { %v1865_v11 = vrot.slane %v165_v56, 10  ;;  %v192_v8 = vmul.f32 1.4453057, %v2348_v1  ;;  %v2427_v12 = vmul.f32 %v151_v58, %v135_v42  ;;  %v1862_v14 = vrot.slane %v166_v61, 9 }
  0x13   :  { %v1866_v15 = vrot.slane %v166_v61, 10  ;;  %v193_v16 = vsub.f32 %v2358_v7, %v142_v44  ;;  %v2430_v24 = vmul.f32 %v152_v59, %v136_v43  ;;  %v194_v9 = vsub.f32 %v2362_v10, %v144_v45 }
  0x14   :  { %v203_v25 = vmul.f32 3.0, %v2358_v7  ;;  %v204_v0 = vmul.f32 3.0, %v2362_v10  ;;  %v2435_v26 = vmul.f32 %v1864_v3, %v178_v63  ;;  %vm2437_vm0 = vcmp.lt.s32.totalorder %v217_v33, 512 }
  0x15   :  { %v197_v28 = vrot.slane %v193_v16, 6  ;;  %v229_v1 = vshrl.u32 %v217_v33, 7  ;;  %v2441_v32 = vmul.f32 %v1861_v5, %v161_v48  ;;  %v198_v34 = vrot.slane %v194_v9, 6 }
  0x16   :  { %v1867_v35 = vrot.slane %v203_v25, 9  ;;  %v1868_v36 = vrot.slane %v204_v0, 9  ;;  %v2304_v37 = vmov 0.2820948   ;;  %v176_v39 = vmul.f32 %v1862_v14, %v162_v60 }
  0x17   :  { %221 = vst.msk [vmem:[#allocation2] ss:$8 sm:$0xf] %vm2437_vm0, %v2304_v37  ;;  %v2445_v40 = vmul.f32 %v1865_v11, %v161_v48  ;;  %v2447_v44 = vmul.f32 %v1866_v15, %v162_v60  ;;  %v2449_v45 = vsub.s32 %v227_v41, %v229_v1  ;;  %v2451_v47 = vmul.f32 %v197_v28, %v191_v4 }
  0x18   :  { %v2453_v49 = vmul.f32 %v198_v34, %v192_v8  ;;  %v213_v33 = vsub.f32 %v2358_v7, %v1867_v35  ;;  %v214_v50 = vsub.f32 %v2362_v10, %v1868_v36 }
  0x19   :  { %v231_v51 = vrot.slane %v2367_v13, %v2449_v45  ;;  %v238_v52 = vrot.slane %v2373_v17, %v2449_v45  ;;  %v259_v48 = vrot.slane %v2376_v18, %v2449_v45  ;;  %v266_v41 = vrot.slane %v2379_v19, %v2449_v45 }
  0x1a   :  { %v2465_v53 = vmul.f32 %v213_v33, %v135_v42  ;;  %v2467_v56 = vmul.f32 %v214_v50, %v136_v43  ;;  %v300_v7 = vrot.slane %v2381_v20, %v2449_v45  ;;  %v307_v10 = vrot.slane %v2383_v21, %v2449_v45 }
  0x1b   :  { %v239_v13 = vcombine.high %v231_v51, %v238_v52  ;;  %v267_v57 = vcombine.low %v259_v48, %v266_v41  ;;  %v280_v58 = vcombine.low %v231_v51, %v238_v52  ;;  %v328_v17 = vrot.slane %v2385_v22, %v2449_v45  ;;  %v39_v41 = vld [vmem:[%s3009_s0 + $0x80] sm:$0xff] }
  0x1c   :  { %v308_v18 = vcombine.low %v300_v7, %v307_v10  ;;  %v335_v19 = vrot.slane %v2387_v23, %v2449_v45  ;;  %v356_v42 = vrot.slane %v2392_v27, %v2449_v45  ;;  %v363_v43 = vrot.slane %v2404_v38, %v2449_v45 }
  0x1d   :  { %v246_v20 = vrot.slane %v239_v13, %v2449_v45  ;;  %v274_v21 = vrot.slane %v267_v57, %v2449_v45  ;;  %v287_v59 = vrot.slane %v280_v58, %v2449_v45  ;;  %v385_v60 = vrot.slane %v2396_v30, %v2449_v45 }
  0x1e   :  { %v315_v22 = vrot.slane %v308_v18, %v2449_v45  ;;  %v336_v61 = vcombine.high %v328_v17, %v335_v19  ;;  %v364_v63 = vcombine.low %v356_v42, %v363_v43  ;;  %v392_v23 = vrot.slane %v2398_v31, %v2449_v45 }
  0x1f   :  { %249 = vst.msk [vmem:[#allocation2 + $0x1] ss:$8 sm:$0xf] %vm2437_vm0, %v246_v20  ;;  %v275_v27 = vcombine.high %v274_v21, %v274_v21  ;;  %290 = vst.msk [vmem:[#allocation2 + $0x3] ss:$8 sm:$0xf] %vm2437_vm0, %v287_v59  ;;  %v413_v38 = vrot.slane %v2409_v46, %v2449_v45  ;;  %v420_v30 = vrot.slane %v2415_v54, %v2449_v45 }
  0x20   :  { %v441_v3 = vrot.slane %v2427_v12, %v2449_v45  ;;  %318 = vst.msk [vmem:[#allocation2 + $0x4] ss:$8 sm:$0xf] %vm2437_vm0, %v315_v22  ;;  %v343_v31 = vrot.slane %v336_v61, %v2449_v45  ;;  %v371_v4 = vrot.slane %v364_v63, %v2449_v45  ;;  %v393_v5 = vcombine.low %v385_v60, %v392_v23  ;;  %v647_v22 = vld [vmem:[%s3010_s3] sm:$0xff]  ;;  %v24_v63 = vld [vmem:[%s3009_s0 + $0x8] sm:$0xff]  ;;  %v642_v60 = vld [vmem:[%s3011_s2 + $0x18] sm:$0xff] }
  0x21   :  { %v448_v11 = vrot.slane %v2430_v24, %v2449_v45  ;;  %278 = vst.msk [vmem:[#allocation2 + $0x2] ss:$8 sm:$0xf] %vm2437_vm0, %v275_v27  ;;  %v421_v46 = vcombine.low %v413_v38, %v420_v30  ;;  %v469_v54 = vrot.slane %v2417_v55, %v2449_v45  ;;  %v476_v8 = vrot.slane %v2420_v62, %v2449_v45  ;;  %v23_v61 = vld [vmem:[%s3009_s0] sm:$0xff]  ;;  %v56_v27 = vld [vmem:[%s3009_s0 + $0x108] sm:$0xff]  ;;  %v41_v38 = vld [vmem:[%s3009_s0 + $0x90] sm:$0xff] }
  0x22   :  { %v497_v12 = vrot.slane %v2441_v32, %v2449_v45  ;;  %346 = vst.msk [vmem:[#allocation2 + $0x5] ss:$8 sm:$0xf] %vm2437_vm0, %v343_v31  ;;  %v372_v14 = vcombine.high %v371_v4, %v371_v4  ;;  %v400_v15 = vrot.slane %v393_v5, %v2449_v45  ;;  %v504_v24 = vrot.slane %v176_v39, %v2449_v45  ;;  %v55_v23 = vld [vmem:[%s3009_s0 + $0x100] sm:$0xff]  ;;  %v42_v30 = vld [vmem:[%s3009_s0 + $0x98] sm:$0xff]  ;;  %v648_v4 = vld [vmem:[%s3010_s3 + $0x8] sm:$0xff] }
  0x23   :  { %v449_v16 = vcombine.high %v441_v3, %v448_v11  ;;  %v428_v9 = vrot.slane %v421_v46, %v2449_v45  ;;  %v477_v25 = vcombine.low %v469_v54, %v476_v8  ;;  %v525_v55 = vrot.slane %v2424_v6, %v2449_v45  ;;  %v73_v3 = vld [vmem:[%s3009_s0 + $0x190] sm:$0xff]  ;;  %v74_v31 = vld [vmem:[%s3009_s0 + $0x198] sm:$0xff] }
  0x24   :  { %v532_v62 = vrot.slane %v2435_v26, %v2449_v45  ;;  %375 = vst.msk [vmem:[#allocation2 + $0x6] ss:$8 sm:$0xf] %vm2437_vm0, %v372_v14  ;;  %403 = vst.msk [vmem:[#allocation2 + $0x7] ss:$8 sm:$0xf] %vm2437_vm0, %v400_v15  ;;  %v505_v28 = vcombine.high %v497_v12, %v504_v24  ;;  %v554_v1 = vrot.slane %v2445_v40, %v2449_v45 }
  0x25   :  { %v456_v0 = vrot.slane %v449_v16, %v2449_v45  ;;  %v561_v32 = vrot.slane %v2447_v44, %v2449_v45  ;;  %431 = vst.msk [vmem:[#allocation2 + $0x20] ss:$8 sm:$0xf] %vm2437_vm0, %v428_v9  ;;  %v484_v6 = vrot.slane %v477_v25, %v2449_v45  ;;  %v582_v34 = vrot.slane %v2451_v47, %v2449_v45  ;;  %v649_v8 = vld [vmem:[%s3010_s3 + $0x10] sm:$0xff]  ;;  %v26_v14 = vld [vmem:[%s3009_s0 + $0x18] sm:$0xff]  ;;  %v43_v24 = vld [vmem:[%s3009_s0 + $0xa0] sm:$0xff] }
  0x26   :  { %v533_v26 = vcombine.low %v525_v55, %v532_v62  ;;  %v589_v35 = vrot.slane %v2453_v49, %v2449_v45  ;;  %v512_v36 = vrot.slane %v505_v28, %v2449_v45  ;;  %v611_v39 = vrot.slane %v2465_v53, %v2449_v45  ;;  %v40_v53 = vld [vmem:[%s3009_s0 + $0x88] sm:$0xff]  ;;  %v25_v12 = vld [vmem:[%s3009_s0 + $0x10] sm:$0xff]  ;;  %v58_v16 = vld [vmem:[%s3009_s0 + $0x118] sm:$0xff] }
  0x27   :  { %459 = vst.msk [vmem:[#allocation2 + $0x21] ss:$8 sm:$0xf] %vm2437_vm0, %v456_v0  ;;  %v562_v37 = vcombine.low %v554_v1, %v561_v32  ;;  %v618_v40 = vrot.slane %v2467_v56, %v2449_v45  ;;  %487 = vst.msk [vmem:[#allocation2 + $0x22] ss:$8 sm:$0xf] %vm2437_vm0, %v484_v6  ;;  %v2091_v18 = vpack.c.bf16 %v40_v53, %v39_v41 }
  0x28   :  { %v540_v44 = vrot.slane %v533_v26, %v2449_v45  ;;  %v590_v47 = vcombine.low %v582_v34, %v589_v35  ;;  %515 = vst.msk [vmem:[#allocation2 + $0x23] ss:$8 sm:$0xf] %vm2437_vm0, %v512_v36  ;;  %v72_v56 = vld [vmem:[%s3009_s0 + $0x188] sm:$0xff]  ;;  %v2094_v5 = vpack.c.bf16 %v24_v63, %v23_v61  ;;  %v2142_v11 = vpack.c.bf16 %v56_v27, %v55_v23  ;;  %v57_v15 = vld [vmem:[%s3009_s0 + $0x110] sm:$0xff]  ;;  %v75_v25 = vld [vmem:[%s3009_s0 + $0x1a0] sm:$0xff] }
  0x29   :  { %v569_v49 = vrot.slane %v562_v37, %v2449_v45  ;;  %v619_v33 = vcombine.low %v611_v39, %v618_v40  ;;  %v2097_v46 = vpack.c.bf16 %v42_v30, %v41_v38  ;;  %v2145_v54 = vpack.c.bf16 %v74_v31, %v73_v3  ;;  %v44_v9 = vld [vmem:[%s3009_s0 + $0xa8] sm:$0xff]  ;;  %v650_v62 = vld [vmem:[%s3010_s3 + $0x18] sm:$0xff]  ;;  %v651_v6 = vld [vmem:[%s3010_s3 + $0x20] sm:$0xff] }
  0x2a   :  { %v541_v50 = vcombine.high %v540_v44, %v540_v44  ;;  %v597_v51 = vrot.slane %v590_v47, %v2449_v45  ;;  %v76_v55 = vld [vmem:[%s3009_s0 + $0x1a8] sm:$0xff]  ;;  %v2100_v0 = vpack.c.bf16 %v26_v14, %v25_v12  ;;  %v2148_v28 = vpack.c.bf16 %v58_v16, %v57_v15  ;;  %v27_v26 = vld [vmem:[%s3009_s0 + $0x20] sm:$0xff]  ;;  %v45_v37 = vld [vmem:[%s3009_s0 + $0xb0] sm:$0xff] }
  0x2b   :  { %572 = vst.msk [vmem:[#allocation2 + $0x25] ss:$8 sm:$0xf] %vm2437_vm0, %v569_v49  ;;  %v626_v52 = vrot.slane %v619_v33, %v2449_v45  ;;  %v71_v45 = vld [vmem:[%s3009_s0 + $0x180] sm:$0xff]  ;;  %v632_v7 = vld [vmem:[#allocation2 + $0x8] sm:$0xff]  ;;  %v634_v10 = vld [vmem:[#allocation2 + $0x18] sm:$0xff]  ;;  %v2103_v1 = vpack.c.bf16 %v44_v9, %v43_v24  ;;  %v2151_v32 = vpack.c.bf16 %v76_v55, %v75_v25 }
  0x2c   :  { %544 = vst.msk [vmem:[#allocation2 + $0x24] ss:$8 sm:$0xf] %vm2437_vm0, %v541_v50  ;;  %v598_v48 = vcombine.high %v597_v51, %v597_v51  ;;  %v631_v29 = vld [vmem:[#allocation2] sm:$0xff]  ;;  %v633_v13 = vld [vmem:[#allocation2 + $0x10] sm:$0xff]  ;;  %v2139_v21 = vpack.c.bf16 %v72_v56, %v71_v45  ;;  %v28_v34 = vld [vmem:[%s3009_s0 + $0x28] sm:$0xff] }
  0x2d   :  { %629 = vst.msk [vmem:[#allocation2 + $0x27] ss:$8 sm:$0xf] %vm2437_vm0, %v626_v52  ;;  %v59_v35 = vld [vmem:[%s3009_s0 + $0x120] sm:$0xff]  ;;  %v60_v36 = vld [vmem:[%s3009_s0 + $0x128] sm:$0xff]  ;;  %v46_v39 = vld [vmem:[%s3009_s0 + $0xb8] sm:$0xff]  ;;  %v2106_v49 = vpack.c.bf16 %v28_v34, %v27_v26 }
  0x2e   :  { %601 = vst.msk [vmem:[#allocation2 + $0x26] ss:$8 sm:$0xf] %vm2437_vm0, %v598_v48  ;;  %v77_v40 = vld [vmem:[%s3009_s0 + $0x1b0] sm:$0xff]  ;;  %v78_v44 = vld [vmem:[%s3009_s0 + $0x1b8] sm:$0xff]  ;;  %v652_v47 = vld [vmem:[%s3010_s3 + $0x28] sm:$0xff]  ;;  %v2154_v33 = vpack.c.bf16 %v60_v36, %v59_v35  ;;  %v2109_v50 = vpack.c.bf16 %v46_v39, %v45_v37 }
  0x2f   :  { %v2157_v51 = vpack.c.bf16 %v78_v44, %v77_v40  ;;  %v653_v52 = vld [vmem:[%s3010_s3 + $0x30] sm:$0xff]  ;;  %v30_v41 = vld [vmem:[%s3009_s0 + $0x38] sm:$0xff]  ;;  %v47_v56 = vld [vmem:[%s3009_s0 + $0xc0] sm:$0xff] }
  0x30   :  { %v29_v48 = vld [vmem:[%s3009_s0 + $0x30] sm:$0xff]  ;;  %v62_v45 = vld [vmem:[%s3009_s0 + $0x138] sm:$0xff]  ;;  %v35_v24 = vld [vmem:[%s3009_s0 + $0x60] sm:$0xff] }
  0x31   :  { %v61_v53 = vld [vmem:[%s3009_s0 + $0x130] sm:$0xff]  ;;  %v82_v63 = vld [vmem:[%s3009_s0 + $0x1d8] sm:$0xff]  ;;  %v36_v9 = vld [vmem:[%s3009_s0 + $0x68] sm:$0xff] }
  0x32   :  { %v81_v61 = vld [vmem:[%s3009_s0 + $0x1d0] sm:$0xff]  ;;  %v34_v31 = vld [vmem:[%s3009_s0 + $0x58] sm:$0xff]  ;;  %v67_v25 = vld [vmem:[%s3009_s0 + $0x160] sm:$0xff] }
  0x33   :  { %v2169_v30 = vpack.c.bf16 %v82_v63, %v81_v61  ;;  %v33_v3 = vld [vmem:[%s3009_s0 + $0x50] sm:$0xff]  ;;  %v68_v55 = vld [vmem:[%s3009_s0 + $0x168] sm:$0xff]  ;;  %v38_v36 = vld [vmem:[%s3009_s0 + $0x78] sm:$0xff] }
  0x34   :  { %v2124_v12 = vpack.c.bf16 %v34_v31, %v33_v3  ;;  %v37_v35 = vld [vmem:[%s3009_s0 + $0x70] sm:$0xff]  ;;  %v70_v39 = vld [vmem:[%s3009_s0 + $0x178] sm:$0xff] }
  0x35   :  { %v636_v57 = vld [vmem:[#allocation2 + $0x28] sm:$0xff]  ;;  %v638_v58 = vld [vmem:[#allocation2 + $0x38] sm:$0xff]  ;;  %v635_v17 = vld [vmem:[#allocation2 + $0x20] sm:$0xff]  ;;  %v2136_v40 = vpack.c.bf16 %v38_v36, %v37_v35 }
  0x36   :  { %v2083_v19 = vpack.c.bf16 %v636_v57, %v632_v7  ;;  %v2087_v42 = vpack.c.bf16 %v638_v58, %v634_v10  ;;  %v2085_v43 = vpack.c.bf16 %v635_v17, %v631_v29  ;;  %v637_v20 = vld [vmem:[#allocation2 + $0x30] sm:$0xff]  ;;  %v48_v7 = vld [vmem:[%s3009_s0 + $0xc8] sm:$0xff]  ;;  %v79_v10 = vld [vmem:[%s3009_s0 + $0x1c0] sm:$0xff]  ;;  %v2112_v57 = vpack.c.bf16 %v30_v41, %v29_v48 }
  0x37   :  { %v2089_v59 = vpack.c.bf16 %v637_v20, %v633_v13  ;;  %v80_v29 = vld [vmem:[%s3009_s0 + $0x1c8] sm:$0xff]  ;;  %v654_v13 = vld [vmem:[%s3010_s3 + $0x38] sm:$0xff]  ;;  %v2160_v58 = vpack.c.bf16 %v62_v45, %v61_v53  ;;  %v2758_v17 = vld [vmem:[%s3011_s2] sm:$0xff] }
  0x38   :  { %2084 = vmatprep.subr.bf16.mxu0 %v2083_v19  ;;  %2088 = vmatprep.subr.bf16.mxu1 %v2087_v42  ;;  %v2163_v19 = vpack.c.bf16 %v80_v29, %v79_v10  ;;  %v31_v42 = vld [vmem:[%s3009_s0 + $0x40] sm:$0xff]  ;;  %v69_v37 = vld [vmem:[%s3009_s0 + $0x170] sm:$0xff] }
  0x39   :  { %2086 = vmatpush1.bf16.msra.mxu0 %v2085_v43  ;;  %2090 = vmatpush1.bf16.msra.mxu1 %v2089_v59  ;;  %v32_v43 = vld [vmem:[%s3009_s0 + $0x48] sm:$0xff]  ;;  %v63_v20 = vld [vmem:[%s3009_s0 + $0x140] sm:$0xff]  ;;  %v49_v59 = vld [vmem:[%s3009_s0 + $0xd0] sm:$0xff]  ;;  %v2184_v44 = vpack.c.bf16 %v70_v39, %v69_v37 }
  0x3a   :  { %2093 = vmatprep.subr.msk.bf16.mxu0 %vm2575_vm2, %v2091_v18  ;;  %2141 = vmatprep.subr.msk.bf16.mxu1 %vm2575_vm2, %v2139_v21  ;;  %v2115_v18 = vpack.c.bf16 %v48_v7, %v47_v56  ;;  %v64_v21 = vld [vmem:[%s3009_s0 + $0x148] sm:$0xff]  ;;  %v2118_v23 = vpack.c.bf16 %v32_v43, %v31_v42 }
  0x3b   :  { %v2166_v27 = vpack.c.bf16 %v64_v21, %v63_v20 }
  0x3c   :  { %1869 = vmatmul.mubr.msk.f32.vlgmr.msra.gmra.mrb[0].mxu0 %vm655_vm1, %v647_v22  ;;  %1877 = vmatmul.mubr.msk.f32.vlgmr.msra.gmra.mrb[0].mxu1 %vm655_vm1, %v647_v22  ;;  %v50_v22 = vld [vmem:[%s3009_s0 + $0xd8] sm:$0xff] }
  0x3d   :  { %750 = vmatprep.mubr.f32.mxu0 %v2302_v2  ;;  %863 = vmatprep.mubr.f32.mxu1 %v2302_v2  ;;  %v2121_v38 = vpack.c.bf16 %v50_v22, %v49_v59 }
  0x40   :  { %1870 = vmatmul.mubr.msk.f32.gmra.mrb[2].mxu0 %vm655_vm1, %v648_v4  ;;  %1878 = vmatmul.mubr.msk.f32.gmra.mrb[2].mxu1 %vm655_vm1, %v648_v4  ;;  %v65_v4 = vld [vmem:[%s3009_s0 + $0x150] sm:$0xff] }
  0x41   :  { %756 = vmatprep.mubr.f32.mxu0 %v2302_v2  ;;  %869 = vmatprep.mubr.f32.mxu1 %v2302_v2 }
  0x42   :  { %2096 = vmatpush3.bf16.xpose.msk.msra.mxu0 %vm2575_vm2, %v2094_v5  ;;  %2144 = vmatpush3.bf16.xpose.msk.msra.mxu1 %vm2575_vm2, %v2142_v11  ;;  %v66_v5 = vld [vmem:[%s3009_s0 + $0x158] sm:$0xff]  ;;  %v51_v11 = vld [vmem:[%s3009_s0 + $0xe0] sm:$0xff] }
  0x43   :  { %2099 = vmatprep.subr.msk.bf16.mxu0 %vm2575_vm2, %v2097_v46  ;;  %2147 = vmatprep.subr.msk.bf16.mxu1 %vm2575_vm2, %v2145_v54  ;;  %v52_v46 = vld [vmem:[%s3009_s0 + $0xe8] sm:$0xff]  ;;  %v83_v54 = vld [vmem:[%s3009_s0 + $0x1e0] sm:$0xff]  ;;  %v2172_v14 = vpack.c.bf16 %v66_v5, %v65_v4 }
  0x44   :  { %1871 = vmatmul.mubr.msk.f32.gmra.mrb[4].mxu0 %vm655_vm1, %v649_v8  ;;  %1879 = vmatmul.mubr.msk.f32.gmra.mrb[4].mxu1 %vm655_vm1, %v649_v8  ;;  %v84_v8 = vld [vmem:[%s3009_s0 + $0x1e8] sm:$0xff]  ;;  %v2127_v15 = vpack.c.bf16 %v52_v46, %v51_v11 }
  0x45   :  { %762 = vmatprep.mubr.f32.mxu0 %v2302_v2  ;;  %875 = vmatprep.mubr.f32.mxu1 %v2302_v2  ;;  %v2175_v16 = vpack.c.bf16 %v84_v8, %v83_v54 }
  0x48   :  { %1872 = vmatmul.mubr.msk.f32.gmra.mrb[6].mxu0 %vm655_vm1, %v650_v62  ;;  %1880 = vmatmul.mubr.msk.f32.gmra.mrb[6].mxu1 %vm655_vm1, %v650_v62  ;;  %v53_v62 = vld [vmem:[%s3009_s0 + $0xf0] sm:$0xff] }
  0x49   :  { %768 = vmatprep.mubr.f32.mxu0 %v2302_v2  ;;  %881 = vmatprep.mubr.f32.mxu1 %v2302_v2 }
  0x4a   :  { %2102 = vmatpush3.bf16.xpose.msk.msra.mxu0 %vm2575_vm2, %v2100_v0  ;;  %2150 = vmatpush3.bf16.xpose.msk.msra.mxu1 %vm2575_vm2, %v2148_v28  ;;  %v54_v0 = vld [vmem:[%s3009_s0 + $0xf8] sm:$0xff]  ;;  %v85_v28 = vld [vmem:[%s3009_s0 + $0x1f0] sm:$0xff] }
  0x4b   :  { %2105 = vmatprep.subr.msk.bf16.mxu0 %vm2575_vm2, %v2103_v1  ;;  %2153 = vmatprep.subr.msk.bf16.mxu1 %vm2575_vm2, %v2151_v32  ;;  %v86_v1 = vld [vmem:[%s3009_s0 + $0x1f8] sm:$0xff]  ;;  %v2130_v32 = vpack.c.bf16 %v36_v9, %v35_v24  ;;  %v2133_v26 = vpack.c.bf16 %v54_v0, %v53_v62 }
  0x4c   :  { %1873 = vmatmul.mubr.msk.f32.gmra.mrb[8].mxu0 %vm655_vm1, %v651_v6  ;;  %1881 = vmatmul.mubr.msk.f32.gmra.mrb[8].mxu1 %vm655_vm1, %v651_v6  ;;  %v2178_v6 = vpack.c.bf16 %v68_v55, %v67_v25  ;;  %v2181_v34 = vpack.c.bf16 %v86_v1, %v85_v28 }
  0x4d   :  { %774 = vmatprep.mubr.f32.mxu0 %v2302_v2  ;;  %887 = vmatprep.mubr.f32.mxu1 %v2302_v2 }
  0x50   :  { %1874 = vmatmul.mubr.msk.f32.gmra.mrb[10].mxu0 %vm655_vm1, %v652_v47  ;;  %1882 = vmatmul.mubr.msk.f32.gmra.mrb[10].mxu1 %vm655_vm1, %v652_v47  ;;  %v640_v47 = vld [vmem:[%s3011_s2 + $0x8] sm:$0xff] }
  0x51   :  { %780 = vmatprep.mubr.f32.mxu0 %v2302_v2  ;;  %893 = vmatprep.mubr.f32.mxu1 %v2302_v2 }
  0x52   :  { %2108 = vmatpush3.bf16.xpose.msk.msra.mxu0 %vm2575_vm2, %v2106_v49  ;;  %2156 = vmatpush3.bf16.xpose.msk.msra.mxu1 %vm2575_vm2, %v2154_v33  ;;  %v641_v49 = vld [vmem:[%s3011_s2 + $0x10] sm:$0xff]  ;;  %v643_v33 = vld [vmem:[%s3011_s2 + $0x20] sm:$0xff] }
  0x53   :  { %2111 = vmatprep.subr.msk.bf16.mxu0 %vm2575_vm2, %v2109_v50  ;;  %2159 = vmatprep.subr.msk.bf16.mxu1 %vm2575_vm2, %v2157_v51  ;;  %v644_v50 = vld [vmem:[%s3011_s2 + $0x28] sm:$0xff]  ;;  %v645_v51 = vld [vmem:[%s3011_s2 + $0x30] sm:$0xff] }
  0x54   :  { %1875 = vmatmul.mubr.msk.f32.gmra.mrb[12].mxu0 %vm655_vm1, %v653_v52  ;;  %1883 = vmatmul.mubr.msk.f32.gmra.mrb[12].mxu1 %vm655_vm1, %v653_v52  ;;  %v646_v52 = vld [vmem:[%s3011_s2 + $0x38] sm:$0xff] }
  0x55   :  { %786 = vmatprep.mubr.f32.mxu0 %v2302_v2  ;;  %899 = vmatprep.mubr.f32.mxu1 %v2302_v2 }
  0x58   :  { %1876 = vmatmul.mubr.msk.f32.gmra.mrb[14].mxu0 %vm655_vm1, %v654_v13  ;;  %1884 = vmatmul.mubr.msk.f32.gmra.mrb[14].mxu1 %vm655_vm1, %v654_v13 }
  0x59   :  { %2019 = vmatprep.mubr.msk.f32.mxu0 %vm655_vm1, %v2758_v17  ;;  %2067 = vmatprep.mubr.msk.f32.mxu1 %vm655_vm1, %v2758_v17 }
  0x5a   :  { %2114 = vmatpush3.bf16.xpose.msk.msra.mxu0 %vm2575_vm2, %v2112_v57  ;;  %2162 = vmatpush3.bf16.xpose.msk.msra.mxu1 %vm2575_vm2, %v2160_v58 }
  0x5b   :  { %2117 = vmatprep.subr.msk.bf16.mxu0 %vm2575_vm2, %v2115_v18  ;;  %2165 = vmatprep.subr.msk.bf16.mxu1 %vm2575_vm2, %v2163_v19 }
  0x62   :  { %2120 = vmatpush3.bf16.xpose.msk.msra.mxu0 %vm2575_vm2, %v2118_v23  ;;  %2168 = vmatpush3.bf16.xpose.msk.msra.mxu1 %vm2575_vm2, %v2166_v27 }
  0x63   :  { %2123 = vmatprep.subr.msk.bf16.mxu0 %vm2575_vm2, %v2121_v38  ;;  %2171 = vmatprep.subr.msk.bf16.mxu1 %vm2575_vm2, %v2169_v30 }
  0x6a   :  { %2126 = vmatpush3.bf16.xpose.msk.msra.mxu0 %vm2575_vm2, %v2124_v12  ;;  %2174 = vmatpush3.bf16.xpose.msk.msra.mxu1 %vm2575_vm2, %v2172_v14 }
  0x6b   :  { %2129 = vmatprep.subr.msk.bf16.mxu0 %vm2575_vm2, %v2127_v15  ;;  %2177 = vmatprep.subr.msk.bf16.mxu1 %vm2575_vm2, %v2175_v16 }
  0x72   :  { %2132 = vmatpush3.bf16.xpose.msk.msra.mxu0 %vm2575_vm2, %v2130_v32  ;;  %2180 = vmatpush3.bf16.xpose.msk.msra.mxu1 %vm2575_vm2, %v2178_v6 }
  0x73   :  { %2135 = vmatprep.subr.msk.bf16.mxu0 %vm2575_vm2, %v2133_v26  ;;  %2183 = vmatprep.subr.msk.bf16.mxu1 %vm2575_vm2, %v2181_v34 }
  0x7a   :  { %2138 = vmatpush3.bf16.xpose.msk.msra.mxu0 %vm2575_vm2, %v2136_v40  ;;  %2186 = vmatpush3.bf16.xpose.msk.msra.mxu1 %vm2575_vm2, %v2184_v44 }
  0x81   :  { %2020 = vmatmul.mubr.msk.f32.vlgmr.msra.gmra.mrb[0].mxu0 %vm655_vm1, %v2758_v17  ;;  %2068 = vmatmul.mubr.msk.f32.vlgmr.msra.gmra.mrb[0].mxu1 %vm655_vm1, %v2758_v17 }
  0x82   :  { %2021 = vmatprep.mubr.msk.f32.mxu0 %vm655_vm1, %v640_v47  ;;  %2069 = vmatprep.mubr.msk.f32.mxu1 %vm655_vm1, %v640_v47 }
  0x85   :  { %2022 = vmatmul.mubr.msk.f32.gmra.mrb[2].mxu0 %vm655_vm1, %v640_v47  ;;  %2070 = vmatmul.mubr.msk.f32.gmra.mrb[2].mxu1 %vm655_vm1, %v640_v47 }
  0x86   :  { %2023 = vmatprep.mubr.msk.f32.mxu0 %vm655_vm1, %v641_v49  ;;  %2071 = vmatprep.mubr.msk.f32.mxu1 %vm655_vm1, %v641_v49 }
  0x89   :  { %2024 = vmatmul.mubr.msk.f32.gmra.mrb[4].mxu0 %vm655_vm1, %v641_v49  ;;  %2072 = vmatmul.mubr.msk.f32.gmra.mrb[4].mxu1 %vm655_vm1, %v641_v49 }
  0x8a   :  { %2025 = vmatprep.mubr.msk.f32.mxu0 %vm655_vm1, %v642_v60  ;;  %2073 = vmatprep.mubr.msk.f32.mxu1 %vm655_vm1, %v642_v60 }
  0x8d   :  { %2026 = vmatmul.mubr.msk.f32.gmra.mrb[6].mxu0 %vm655_vm1, %v642_v60  ;;  %2074 = vmatmul.mubr.msk.f32.gmra.mrb[6].mxu1 %vm655_vm1, %v642_v60 }
  0x8e   :  { %2027 = vmatprep.mubr.msk.f32.mxu0 %vm655_vm1, %v643_v33  ;;  %2075 = vmatprep.mubr.msk.f32.mxu1 %vm655_vm1, %v643_v33 }
  0x91   :  { %2028 = vmatmul.mubr.msk.f32.gmra.mrb[8].mxu0 %vm655_vm1, %v643_v33  ;;  %2076 = vmatmul.mubr.msk.f32.gmra.mrb[8].mxu1 %vm655_vm1, %v643_v33 }
  0x92   :  { %2029 = vmatprep.mubr.msk.f32.mxu0 %vm655_vm1, %v644_v50  ;;  %2077 = vmatprep.mubr.msk.f32.mxu1 %vm655_vm1, %v644_v50 }
  0x95   :  { %2030 = vmatmul.mubr.msk.f32.gmra.mrb[10].mxu0 %vm655_vm1, %v644_v50  ;;  %2078 = vmatmul.mubr.msk.f32.gmra.mrb[10].mxu1 %vm655_vm1, %v644_v50 }
  0x96   :  { %2031 = vmatprep.mubr.msk.f32.mxu0 %vm655_vm1, %v645_v51  ;;  %2079 = vmatprep.mubr.msk.f32.mxu1 %vm655_vm1, %v645_v51 }
  0x99   :  { %2032 = vmatmul.mubr.msk.f32.gmra.mrb[12].mxu0 %vm655_vm1, %v645_v51  ;;  %2080 = vmatmul.mubr.msk.f32.gmra.mrb[12].mxu1 %vm655_vm1, %v645_v51 }
  0x9a   :  { %2033 = vmatprep.mubr.msk.f32.mxu0 %vm655_vm1, %v646_v52  ;;  %2081 = vmatprep.mubr.msk.f32.mxu1 %vm655_vm1, %v646_v52 }
  0x9d   :  { %2034 = vmatmul.mubr.msk.f32.gmra.mrb[14].mxu0 %vm655_vm1, %v646_v52  ;;  %2082 = vmatmul.mubr.msk.f32.gmra.mrb[14].mxu1 %vm655_vm1, %v646_v52 }
  0x9e   :  { %1477 = vmatprep.mubr.f32.mxu0 %v2302_v2  ;;  %1590 = vmatprep.mubr.f32.mxu1 %v2302_v2 }
 0x154   :  { %v1188_v48 = vpop.f32.mrb[0].mxu0  ;;  %v1301_v41 = vpop.f32.mrb[0].mxu1 }
 0x155   :  { %v1190_v53 = vpop.f32.mrb[1].mxu0  ;;  %v1303_v45 = vpop.f32.mrb[1].mxu1  ;;  %v1348_v10 = vmax.f32 %v1188_v48, 0.0  ;;  %v1350_v29 = vmax.f32 %v1301_v41, 0.0 }
 0x156   :  { %v1349_v18 = vmax.f32 %v1190_v53, 0.0  ;;  %v1351_v19 = vmax.f32 %v1303_v45, 0.0 }
 0x158   :  { %v1194_v56 = vpop.f32.mrb[2].mxu0  ;;  %v1307_v7 = vpop.f32.mrb[2].mxu1 }
 0x159   :  { %v1352_v13 = vmax.f32 %v1194_v56, 0.0  ;;  %v1354_v57 = vmax.f32 %v1307_v7, 0.0  ;;  %v1196_v58 = vpop.f32.mrb[3].mxu0  ;;  %v1309_v17 = vpop.f32.mrb[3].mxu1 }
 0x15a   :  { %v1353_v42 = vmax.f32 %v1196_v58, 0.0  ;;  %v1355_v43 = vmax.f32 %v1309_v17, 0.0 }
 0x15b   :  { %v2189_v20 = vpack.c.bf16 %v1352_v13, %v1348_v10  ;;  %v2205_v21 = vpack.c.bf16 %v1354_v57, %v1350_v29 }
 0x15c   :  { %v2187_v59 = vpack.c.bf16 %v1353_v42, %v1349_v18  ;;  %v2203_v22 = vpack.c.bf16 %v1355_v43, %v1351_v19  ;;  %v1200_v61 = vpop.f32.mrb[4].mxu0  ;;  %v1313_v63 = vpop.f32.mrb[4].mxu1 }
 0x15d   :  { %v1202_v23 = vpop.f32.mrb[5].mxu0  ;;  %v1315_v27 = vpop.f32.mrb[5].mxu1  ;;  %v1356_v3 = vmax.f32 %v1200_v61, 0.0  ;;  %v1358_v31 = vmax.f32 %v1313_v63, 0.0  ;;  %v1383_v61 = vld [vmem:[%s3012_s4 + $0x18] sm:$0xff]  ;;  %v1384_v63 = vld [vmem:[%s3012_s4 + $0x20] sm:$0xff] }
 0x15e   :  { %2188 = vmatprep.subr.bf16.mxu0 %v2187_v59  ;;  %2204 = vmatprep.subr.bf16.mxu1 %v2203_v22  ;;  %v1357_v54 = vmax.f32 %v1202_v23, 0.0  ;;  %v1359_v8 = vmax.f32 %v1315_v27, 0.0  ;;  %v1381_v59 = vld [vmem:[%s3012_s4 + $0x8] sm:$0xff]  ;;  %v1382_v22 = vld [vmem:[%s3012_s4 + $0x10] sm:$0xff] }
 0x15f   :  { %2190 = vmatpush1.bf16.msra.mxu0 %v2189_v20  ;;  %2206 = vmatpush1.bf16.msra.mxu1 %v2205_v21  ;;  %v1380_v21 = vld [vmem:[%s3012_s4] sm:$0xff]  ;;  %v1385_v23 = vld [vmem:[%s3012_s4 + $0x28] sm:$0xff]  ;;  %v1386_v27 = vld [vmem:[%s3012_s4 + $0x30] sm:$0xff] }
 0x160   :  { %v1206_v38 = vpop.f32.mrb[6].mxu0  ;;  %v1319_v30 = vpop.f32.mrb[6].mxu1 }
 0x161   :  { %v1360_v4 = vmax.f32 %v1206_v38, 0.0  ;;  %v1362_v5 = vmax.f32 %v1319_v30, 0.0  ;;  %v1208_v11 = vpop.f32.mrb[7].mxu0  ;;  %v1321_v46 = vpop.f32.mrb[7].mxu1  ;;  %v1387_v38 = vld [vmem:[%s3012_s4 + $0x38] sm:$0xff] }
 0x162   :  { %v1361_v12 = vmax.f32 %v1208_v11, 0.0  ;;  %v1363_v14 = vmax.f32 %v1321_v46, 0.0 }
 0x163   :  { %v2193_v15 = vpack.c.bf16 %v1360_v4, %v1356_v3  ;;  %v2209_v16 = vpack.c.bf16 %v1362_v5, %v1358_v31 }
 0x164   :  { %v2191_v24 = vpack.c.bf16 %v1361_v12, %v1357_v54  ;;  %v2207_v9 = vpack.c.bf16 %v1363_v14, %v1359_v8  ;;  %v1212_v25 = vpop.f32.mrb[8].mxu0  ;;  %v1325_v55 = vpop.f32.mrb[8].mxu1 }
 0x165   :  { %v1214_v62 = vpop.f32.mrb[9].mxu0  ;;  %v1327_v0 = vpop.f32.mrb[9].mxu1  ;;  %v1364_v32 = vmax.f32 %v1212_v25, 0.0  ;;  %v1366_v6 = vmax.f32 %v1325_v55, 0.0 }
 0x166   :  { %2192 = vmatprep.subr.bf16.mxu0 %v2191_v24  ;;  %2208 = vmatprep.subr.bf16.mxu1 %v2207_v9  ;;  %v1365_v37 = vmax.f32 %v1214_v62, 0.0  ;;  %v1367_v39 = vmax.f32 %v1327_v0, 0.0 }
 0x167   :  { %2194 = vmatpush1.bf16.msra.mxu0 %v2193_v15  ;;  %2210 = vmatpush1.bf16.msra.mxu1 %v2209_v16 }
 0x168   :  { %v1218_v28 = vpop.f32.mrb[10].mxu0  ;;  %v1331_v1 = vpop.f32.mrb[10].mxu1 }
 0x169   :  { %v1368_v26 = vmax.f32 %v1218_v28, 0.0  ;;  %v1370_v34 = vmax.f32 %v1331_v1, 0.0  ;;  %v1220_v35 = vpop.f32.mrb[11].mxu0  ;;  %v1333_v36 = vpop.f32.mrb[11].mxu1 }
 0x16a   :  { %v1369_v40 = vmax.f32 %v1220_v35, 0.0  ;;  %v1371_v44 = vmax.f32 %v1333_v36, 0.0 }
 0x16b   :  { %v2197_v47 = vpack.c.bf16 %v1368_v26, %v1364_v32  ;;  %v2213_v49 = vpack.c.bf16 %v1370_v34, %v1366_v6 }
 0x16c   :  { %v2195_v60 = vpack.c.bf16 %v1369_v40, %v1365_v37  ;;  %v2211_v33 = vpack.c.bf16 %v1371_v44, %v1367_v39  ;;  %v1224_v50 = vpop.f32.mrb[12].mxu0  ;;  %v1337_v51 = vpop.f32.mrb[12].mxu1 }
 0x16d   :  { %v1226_v52 = vpop.f32.mrb[13].mxu0  ;;  %v1339_v48 = vpop.f32.mrb[13].mxu1  ;;  %v1372_v45 = vmax.f32 %v1224_v50, 0.0  ;;  %v1374_v56 = vmax.f32 %v1337_v51, 0.0 }
 0x16e   :  { %2196 = vmatprep.subr.bf16.mxu0 %v2195_v60  ;;  %2212 = vmatprep.subr.bf16.mxu1 %v2211_v33  ;;  %v1373_v57 = vmax.f32 %v1226_v52, 0.0  ;;  %v1375_v58 = vmax.f32 %v1339_v48, 0.0 }
 0x16f   :  { %2198 = vmatpush1.bf16.msra.mxu0 %v2197_v47  ;;  %2214 = vmatpush1.bf16.msra.mxu1 %v2213_v49 }
 0x170   :  { %v1230_v41 = vpop.f32.mrb[14].mxu0  ;;  %v1343_v53 = vpop.f32.mrb[14].mxu1 }
 0x171   :  { %v1376_v7 = vmax.f32 %v1230_v41, 0.0  ;;  %v1378_v10 = vmax.f32 %v1343_v53, 0.0  ;;  %v1232_v29 = vpop.f32.mrb[15].mxu0  ;;  %v1345_v13 = vpop.f32.mrb[15].mxu1 }
 0x172   :  { %v1377_v17 = vmax.f32 %v1232_v29, 0.0  ;;  %v1379_v18 = vmax.f32 %v1345_v13, 0.0 }
 0x173   :  { %v2201_v19 = vpack.c.bf16 %v1376_v7, %v1372_v45  ;;  %v2217_v42 = vpack.c.bf16 %v1378_v10, %v1374_v56 }
 0x174   :  { %v2199_v43 = vpack.c.bf16 %v1377_v17, %v1373_v57  ;;  %v2215_v20 = vpack.c.bf16 %v1379_v18, %v1375_v58 }
 0x176   :  { %2200 = vmatprep.subr.bf16.mxu0 %v2199_v43  ;;  %2216 = vmatprep.subr.bf16.mxu1 %v2215_v20 }
 0x177   :  { %2202 = vmatpush1.bf16.msra.mxu0 %v2201_v19  ;;  %2218 = vmatpush1.bf16.msra.mxu1 %v2217_v42 }
 0x17a   :  { %1965 = vmatmul.mubr.msk.f32.vlgmr.msra.gmra.mrb[16].mxu0 %vm1388_vm3, %v1380_v21  ;;  %1973 = vmatmul.mubr.msk.f32.vlgmr.msra.gmra.mrb[16].mxu1 %vm1388_vm3, %v1380_v21 }
 0x17b   :  { %1483 = vmatprep.mubr.f32.mxu0 %v2302_v2  ;;  %1596 = vmatprep.mubr.f32.mxu1 %v2302_v2 }
 0x17e   :  { %1966 = vmatmul.mubr.msk.f32.gmra.mrb[18].mxu0 %vm1388_vm3, %v1381_v59  ;;  %1974 = vmatmul.mubr.msk.f32.gmra.mrb[18].mxu1 %vm1388_vm3, %v1381_v59 }
 0x17f   :  { %1489 = vmatprep.mubr.f32.mxu0 %v2302_v2  ;;  %1602 = vmatprep.mubr.f32.mxu1 %v2302_v2 }
 0x182   :  { %1967 = vmatmul.mubr.msk.f32.gmra.mrb[20].mxu0 %vm1388_vm3, %v1382_v22  ;;  %1975 = vmatmul.mubr.msk.f32.gmra.mrb[20].mxu1 %vm1388_vm3, %v1382_v22 }
 0x183   :  { %1495 = vmatprep.mubr.f32.mxu0 %v2302_v2  ;;  %1608 = vmatprep.mubr.f32.mxu1 %v2302_v2 }
 0x186   :  { %1968 = vmatmul.mubr.msk.f32.gmra.mrb[22].mxu0 %vm1388_vm3, %v1383_v61  ;;  %1976 = vmatmul.mubr.msk.f32.gmra.mrb[22].mxu1 %vm1388_vm3, %v1383_v61 }
 0x187   :  { %1501 = vmatprep.mubr.f32.mxu0 %v2302_v2  ;;  %1614 = vmatprep.mubr.f32.mxu1 %v2302_v2 }
 0x18a   :  { %1969 = vmatmul.mubr.msk.f32.gmra.mrb[24].mxu0 %vm1388_vm3, %v1384_v63  ;;  %1977 = vmatmul.mubr.msk.f32.gmra.mrb[24].mxu1 %vm1388_vm3, %v1384_v63 }
 0x18b   :  { %1507 = vmatprep.mubr.f32.mxu0 %v2302_v2  ;;  %1620 = vmatprep.mubr.f32.mxu1 %v2302_v2 }
 0x18e   :  { %1970 = vmatmul.mubr.msk.f32.gmra.mrb[26].mxu0 %vm1388_vm3, %v1385_v23  ;;  %1978 = vmatmul.mubr.msk.f32.gmra.mrb[26].mxu1 %vm1388_vm3, %v1385_v23 }
 0x18f   :  { %1513 = vmatprep.mubr.f32.mxu0 %v2302_v2  ;;  %1626 = vmatprep.mubr.f32.mxu1 %v2302_v2 }
 0x192   :  { %1971 = vmatmul.mubr.msk.f32.gmra.mrb[28].mxu0 %vm1388_vm3, %v1386_v27  ;;  %1979 = vmatmul.mubr.msk.f32.gmra.mrb[28].mxu1 %vm1388_vm3, %v1386_v27 }
 0x193   :  { %1519 = vmatprep.mubr.f32.mxu0 %v2302_v2  ;;  %1632 = vmatprep.mubr.f32.mxu1 %v2302_v2 }
 0x196   :  { %1972 = vmatmul.mubr.msk.f32.gmra.mrb[30].mxu0 %vm1388_vm3, %v1387_v38  ;;  %1980 = vmatmul.mubr.msk.f32.gmra.mrb[30].mxu1 %vm1388_vm3, %v1387_v38 }
 0x197   :  { %1739 = vmatprep.mubr.f32.mxu0 %v2302_v2  ;;  %1810 = vmatprep.mubr.f32.mxu1 %v2302_v2 }
 0x24d   :  { %v1479_v30 = vpop.f32.mrb[16].mxu0  ;;  %v1592_v3 = vpop.f32.mrb[16].mxu1 }
 0x24e   :  { %v1481_v31 = vpop.f32.mrb[17].mxu0  ;;  %v1594_v4 = vpop.f32.mrb[17].mxu1  ;;  %v1639_v46 = vmax.f32 %v1479_v30, 0.0  ;;  %v1641_v54 = vmax.f32 %v1592_v3, 0.0 }
 0x24f   :  { %v1640_v16 = vmax.f32 %v1481_v31, 0.0  ;;  %v1642_v24 = vmax.f32 %v1594_v4, 0.0 }
 0x251   :  { %v1485_v5 = vpop.f32.mrb[18].mxu0  ;;  %v1598_v11 = vpop.f32.mrb[18].mxu1 }
 0x252   :  { %v1643_v8 = vmax.f32 %v1485_v5, 0.0  ;;  %v1645_v12 = vmax.f32 %v1598_v11, 0.0  ;;  %v1487_v14 = vpop.f32.mrb[19].mxu0  ;;  %v1600_v15 = vpop.f32.mrb[19].mxu1 }
 0x253   :  { %v1644_v9 = vmax.f32 %v1487_v14, 0.0  ;;  %v1646_v25 = vmax.f32 %v1600_v15, 0.0 }
 0x254   :  { %v2221_v55 = vpack.c.bf16 %v1643_v8, %v1639_v46  ;;  %v2237_v62 = vpack.c.bf16 %v1645_v12, %v1641_v54 }
 0x255   :  { %v2219_v0 = vpack.c.bf16 %v1644_v9, %v1640_v16  ;;  %v2235_v2 = vpack.c.bf16 %v1646_v25, %v1642_v24  ;;  %v1491_v28 = vpop.f32.mrb[20].mxu0  ;;  %v1604_v1 = vpop.f32.mrb[20].mxu1 }
 0x256   :  { %v1493_v32 = vpop.f32.mrb[21].mxu0  ;;  %v1606_v6 = vpop.f32.mrb[21].mxu1  ;;  %v1647_v35 = vmax.f32 %v1491_v28, 0.0  ;;  %v1649_v36 = vmax.f32 %v1604_v1, 0.0 }
 0x257   :  { %2220 = vmatprep.subr.bf16.mxu0 %v2219_v0  ;;  %2236 = vmatprep.subr.bf16.mxu1 %v2235_v2  ;;  %v1648_v47 = vmax.f32 %v1493_v32, 0.0  ;;  %v1650_v49 = vmax.f32 %v1606_v6, 0.0 }
 0x258   :  { %2222 = vmatpush1.bf16.msra.mxu0 %v2221_v55  ;;  %2238 = vmatpush1.bf16.msra.mxu1 %v2237_v62  ;;  %v1671_v55 = vld [vmem:[%s3013_s5] sm:$0x7] }
 0x259   :  { %v1497_v26 = vpop.f32.mrb[22].mxu0  ;;  %v1610_v34 = vpop.f32.mrb[22].mxu1 }
 0x25a   :  { %v1651_v37 = vmax.f32 %v1497_v26, 0.0  ;;  %v1653_v39 = vmax.f32 %v1610_v34, 0.0  ;;  %v1499_v40 = vpop.f32.mrb[23].mxu0  ;;  %v1612_v44 = vpop.f32.mrb[23].mxu1 }
 0x25b   :  { %v1652_v60 = vmax.f32 %v1499_v40, 0.0  ;;  %v1654_v33 = vmax.f32 %v1612_v44, 0.0 }
 0x25c   :  { %v2225_v50 = vpack.c.bf16 %v1651_v37, %v1647_v35  ;;  %v2241_v51 = vpack.c.bf16 %v1653_v39, %v1649_v36 }
 0x25d   :  { %v2223_v52 = vpack.c.bf16 %v1652_v60, %v1648_v47  ;;  %v2239_v48 = vpack.c.bf16 %v1654_v33, %v1650_v49  ;;  %v1503_v41 = vpop.f32.mrb[24].mxu0  ;;  %v1616_v53 = vpop.f32.mrb[24].mxu1 }
 0x25e   :  { %v1505_v45 = vpop.f32.mrb[25].mxu0  ;;  %v1618_v56 = vpop.f32.mrb[25].mxu1  ;;  %v1655_v29 = vmax.f32 %v1503_v41, 0.0  ;;  %v1657_v13 = vmax.f32 %v1616_v53, 0.0 }
 0x25f   :  { %2224 = vmatprep.subr.bf16.mxu0 %v2223_v52  ;;  %2240 = vmatprep.subr.bf16.mxu1 %v2239_v48  ;;  %v1656_v19 = vmax.f32 %v1505_v45, 0.0  ;;  %v1658_v42 = vmax.f32 %v1618_v56, 0.0 }
 0x260   :  { %2226 = vmatpush1.bf16.msra.mxu0 %v2225_v50  ;;  %2242 = vmatpush1.bf16.msra.mxu1 %v2241_v51 }
 0x261   :  { %v1509_v7 = vpop.f32.mrb[26].mxu0  ;;  %v1622_v10 = vpop.f32.mrb[26].mxu1 }
 0x262   :  { %v1659_v57 = vmax.f32 %v1509_v7, 0.0  ;;  %v1661_v58 = vmax.f32 %v1622_v10, 0.0  ;;  %v1511_v17 = vpop.f32.mrb[27].mxu0  ;;  %v1624_v18 = vpop.f32.mrb[27].mxu1 }
 0x263   :  { %v1660_v43 = vmax.f32 %v1511_v17, 0.0  ;;  %v1662_v20 = vmax.f32 %v1624_v18, 0.0 }
 0x264   :  { %v2229_v21 = vpack.c.bf16 %v1659_v57, %v1655_v29  ;;  %v2245_v59 = vpack.c.bf16 %v1661_v58, %v1657_v13 }
 0x265   :  { %v2227_v22 = vpack.c.bf16 %v1660_v43, %v1656_v19  ;;  %v2243_v61 = vpack.c.bf16 %v1662_v20, %v1658_v42  ;;  %v1515_v63 = vpop.f32.mrb[28].mxu0  ;;  %v1628_v23 = vpop.f32.mrb[28].mxu1 }
 0x266   :  { %v1517_v27 = vpop.f32.mrb[29].mxu0  ;;  %v1630_v38 = vpop.f32.mrb[29].mxu1  ;;  %v1663_v31 = vmax.f32 %v1515_v63, 0.0  ;;  %v1665_v4 = vmax.f32 %v1628_v23, 0.0 }
 0x267   :  { %2228 = vmatprep.subr.bf16.mxu0 %v2227_v22  ;;  %2244 = vmatprep.subr.bf16.mxu1 %v2243_v61  ;;  %v1664_v8 = vmax.f32 %v1517_v27, 0.0  ;;  %v1666_v12 = vmax.f32 %v1630_v38, 0.0 }
 0x268   :  { %2230 = vmatpush1.bf16.msra.mxu0 %v2229_v21  ;;  %2246 = vmatpush1.bf16.msra.mxu1 %v2245_v59 }
 0x269   :  { %v1521_v30 = vpop.f32.mrb[30].mxu0  ;;  %v1634_v3 = vpop.f32.mrb[30].mxu1 }
 0x26a   :  { %v1667_v5 = vmax.f32 %v1521_v30, 0.0  ;;  %v1669_v11 = vmax.f32 %v1634_v3, 0.0  ;;  %v1523_v46 = vpop.f32.mrb[31].mxu0  ;;  %v1636_v54 = vpop.f32.mrb[31].mxu1 }
 0x26b   :  { %v1668_v14 = vmax.f32 %v1523_v46, 0.0  ;;  %v1670_v15 = vmax.f32 %v1636_v54, 0.0 }
 0x26c   :  { %v2233_v16 = vpack.c.bf16 %v1667_v5, %v1663_v31  ;;  %v2249_v24 = vpack.c.bf16 %v1669_v11, %v1665_v4 }
 0x26d   :  { %v2231_v9 = vpack.c.bf16 %v1668_v14, %v1664_v8  ;;  %v2247_v25 = vpack.c.bf16 %v1670_v15, %v1666_v12 }
 0x26f   :  { %2232 = vmatprep.subr.bf16.mxu0 %v2231_v9  ;;  %2248 = vmatprep.subr.bf16.mxu1 %v2247_v25 }
 0x270   :  { %2234 = vmatpush1.bf16.msra.mxu0 %v2233_v16  ;;  %2250 = vmatpush1.bf16.msra.mxu1 %v2249_v24 }
 0x273   :  { %1981 = vmatmul.mubr.msk.f32.vlgmr.msra.gmra.mrb[32].mxu0 %vm1388_vm3, %v1671_v55  ;;  %1982 = vmatmul.mubr.msk.f32.vlgmr.msra.gmra.mrb[32].mxu1 %vm1388_vm3, %v1671_v55 }
 0x346   :  { %v1741_v62 = vpop.f32.mrb[32].mxu0  ;;  %v1812_v0 = vpop.f32.mrb[32].mxu1 }
 0x347   :  { %v1983_v2 = vmul.f32 -1.442695, %v1741_v62  ;;  %v1985_v28 = vmul.f32 -1.442695, %v1812_v0  ;;  %v1743_v1 = vpop.f32.mrb[33].mxu0  ;;  %v1814_v32 = vpop.f32.mrb[33].mxu1 }
 0x348   :  { %v1984_v6 = vmul.f32 -1.442695, %v1743_v1  ;;  %v1986_v26 = vmul.f32 -1.442695, %v1814_v32 }
 0x349   :  { %2286 = vpow2.f32 %v1983_v2 }
 0x34a   :  { %2288 = vpow2.f32 %v1985_v28 }
 0x34b   :  { %2290 = vpow2.f32 %v1984_v6 }
 0x34c   :  { %2292 = vpow2.f32 %v1986_v26 }
 0x353   :  { %v2287_v34 = vpop.eup %2286 }
 0x354   :  { %v2289_v35 = vpop.eup %2288  ;;  %v1829_v36 = vadd.f32 1.0, %v2287_v34 }
 0x355   :  { %v2291_v37 = vpop.eup %2290  ;;  %v1831_v39 = vadd.f32 1.0, %v2289_v35 }
 0x356   :  { %v2293_v40 = vpop.eup %2292  ;;  %2294 = vrcp.f32 %v1829_v36  ;;  %v1830_v44 = vadd.f32 1.0, %v2291_v37 }
 0x357   :  { %2296 = vrcp.f32 %v1831_v39  ;;  %v1832_v47 = vadd.f32 1.0, %v2293_v40 }
 0x358   :  { %2298 = vrcp.f32 %v1830_v44 }
 0x359   :  { %2300 = vrcp.f32 %v1832_v47 }
 0x360   :  { %v2295_v49 = vpop.eup %2294 }
 0x361   :  { %v2297_v60 = vpop.eup %2296 }
 0x362   :  { %v2299_v33 = vpop.eup %2298 }
 0x363   :  { %v2301_v50 = vpop.eup %2300  ;;  %v1845_v51 = vcombine.low %v2295_v49, %v2299_v33 }
 0x364   :  { %v1846_v52 = vcombine.low %v2297_v60, %v2301_v50 }
 0x365   :  { %1849 = vst [vmem:[%s3014_s6] sm:$0x77] %v1845_v51 }
 0x366   :  { %1850 = vst [vmem:[%s3014_s6 + $0x8] sm:$0x77] %v1846_v52 }

</bundles_post_ra>
